<compile_context>
chip_gen: v5e
topology: v5e:2x2
jax: 0.10.0
libtpu: 0.0.40
codegen_flags: <defaults>
</compile_context>

<pallas_src>
import math

import jax
import jax.numpy as jnp
from jax import lax
from jax.experimental import pallas as pl
from jax.experimental.pallas import tpu as pltpu


def _round_up(x, m):
    return ((x + m - 1) // m) * m


# ----------------------------------------------------------------------------
# Pallas kernel.
#   idx_ref : (tm, 5)   int32 row indices into the stacked embedding table
#             (offsets pre-applied: hour, weekday+24, day+31, month+63, pos+76).
#   x3_ref  : (tm, 3C)  [x[t-1], x[t], x[t+1]] per row (circular, per sequence).
#   w_ref   : (3C, Dp)  stacked conv taps (zero-padded to lane-dense Dp).
#   tab_ref : (Tp, Dp)  stacked fixed tables [hour|weekday|day|month|pe+bias],
#             zero-padded rows at the bottom to a multiple of 8.
#   o_ref   : (tm, Dp)
# ----------------------------------------------------------------------------
def _embed_kernel(idx_ref, x3_ref, w_ref, tab_ref, o_ref):
    # Value embedding: circular conv (kernel=3) as a single MXU matmul.
    acc = jnp.dot(x3_ref[...], w_ref[...], preferred_element_type=jnp.float32)

    # Temporal + positional (+ folded conv bias): multi-hot selector (tm, Tp)
    # against the resident table -> second matmul on the otherwise-idle MXU.
    tm = idx_ref.shape[0]
    tp = tab_ref.shape[0]
    col = lax.broadcasted_iota(jnp.int32, (tm, tp), 1)
    match = col == idx_ref[:, 0:1]
    for k in range(1, idx_ref.shape[1]):          # 5 disjoint index ranges
        match = match | (col == idx_ref[:, k:k + 1])
    acc = acc + jnp.dot(match.astype(jnp.float32), tab_ref[...],
                        preferred_element_type=jnp.float32)

    o_ref[...] = acc.astype(o_ref.dtype)


def _sinusoid_table(n, d):
    """PyTorch-style fixed sinusoidal table: sin on even cols, cos on odd."""
    pos = jnp.arange(n, dtype=jnp.float32)[:, None]
    div = jnp.exp(jnp.arange(0, d, 2, dtype=jnp.float32)
                  * -(math.log(10000.0) / d))
    ang = pos * div
    tab = jnp.zeros((n, d), jnp.float32)
    tab = tab.at[:, 0::2].set(jnp.sin(ang))
    tab = tab.at[:, 1::2].set(jnp.cos(ang[:, : d // 2]))   # safe for odd d
    return tab


def init_params(key, c_in, d_model):
    """Deterministic parameter init matching the PyTorch module shapes."""
    k_w, k_b = jax.random.split(key)
    # Conv1d(c_in, d_model, kernel_size=3): weight (d_model, c_in, 3)
    fan_in = c_in * 3
    gain = math.sqrt(2.0 / (1.0 + 0.01 ** 2))          # kaiming, leaky_relu
    std = gain / math.sqrt(fan_in)
    conv_w = std * jax.random.normal(k_w, (d_model, c_in, 3), jnp.float32)
    bound = 1.0 / math.sqrt(fan_in)
    conv_b = jax.random.uniform(k_b, (d_model,), jnp.float32, -bound, bound)
    # Fixed (non-trainable) sinusoidal embedding tables for freq='h'
    return {
        "conv_w": conv_w,
        "conv_b": conv_b,
        "hour": _sinusoid_table(24, d_model),
        "weekday": _sinusoid_table(7, d_model),
        "day": _sinusoid_table(32, d_model),
        "month": _sinusoid_table(13, d_model),
    }


def data_embedding_new(x, x_mark, params, *, tm=512):
    """
    x      : (B, L, C_in) float32 values
    x_mark : (B, L, >=4)  int time marks [month, day, weekday, hour, (minute)]
    returns: (B, L, d_model) float32
    """
    B, L, C = x.shape
    D = params["conv_w"].shape[0]
    M = B * L
    Dp = _round_up(D, 128)                 # lane-dense output width

    # --- circular-conv input rows (M, 3C): [x[t-1], x[t], x[t+1]] ------------
    # Rolls are per-sequence (axis=1) BEFORE the (B,L)->M reshape.
    x3 = jnp.concatenate(
        [jnp.roll(x, 1, axis=1), x, jnp.roll(x, -1, axis=1)], axis=-1
    ).reshape(M, 3 * C).astype(jnp.float32)

    # --- stacked conv taps (3C, Dp): rows match the x3 concat order ----------
    w3 = jnp.concatenate(
        [params["conv_w"][:, :, 0].T,      # multiplies x[t-1]
         params["conv_w"][:, :, 1].T,      # multiplies x[t]
         params["conv_w"][:, :, 2].T],     # multiplies x[t+1]
        axis=0)
    w3 = jnp.pad(w3, ((0, 0), (0, Dp - D))).astype(jnp.float32)

    # --- stacked embedding table: [hour|weekday|day|month|pe+bias] -----------
    # conv bias folded into the positional rows (pos is selected exactly once).
    pe = _sinusoid_table(L, D) + params["conv_b"][None, :]
    table = jnp.concatenate(
        [params["hour"],                   # rows [0, 24)
         params["weekday"],                # rows [24, 31)
         params["day"],                    # rows [31, 63)
         params["month"],                  # rows [63, 76)
         pe],                              # rows [76, 76+L)
        axis=0)
    T0 = table.shape[0]
    Tp = _round_up(T0, 8)                  # sublane-aligned table
    table = jnp.pad(table, ((0, Tp - T0), (0, Dp - D))).astype(jnp.float32)

    # --- per-row table indices (offsets pre-applied) --------------------------
    xm = x_mark.astype(jnp.int32)
    pos = jnp.broadcast_to(jnp.arange(L, dtype=jnp.int32)[None, :], (B, L))
    idx = jnp.stack(
        [xm[:, :, 3],            # hour
         xm[:, :, 2] + 24,       # weekday
         xm[:, :, 1] + 31,       # day
         xm[:, :, 0] + 63,       # month
         pos + 76],              # positional (+ folded bias)
        axis=-1).reshape(M, 5)

    # --- pad rows so the grid tiles evenly (tm multiple of 8) ----------------
    tm_eff = min(tm, _round_up(M, 8))
    Mp = _round_up(M, tm_eff)
    if Mp != M:
        x3 = jnp.pad(x3, ((0, Mp - M), (0, 0)))
        idx = jnp.pad(idx, ((0, Mp - M), (0, 0)))

    out = pl.pallas_call(
        _embed_kernel,
        out_shape=jax.ShapeDtypeStruct((Mp, Dp), jnp.float32),
        grid_spec=pltpu.PrefetchScalarGridSpec(
            num_scalar_prefetch=0,
            grid=(Mp // tm_eff,),
            in_specs=[pl.BlockSpec((tm_eff, 5), lambda i: (i, 0)),
                      pl.BlockSpec((tm_eff, 3 * C), lambda i: (i, 0)),
                      pl.BlockSpec((3 * C, Dp), lambda i: (0, 0)),
                      pl.BlockSpec((Tp, Dp), lambda i: (0, 0))],
            out_specs=pl.BlockSpec((tm_eff, Dp), lambda i: (i, 0)),
        ),
        compiler_params=pltpu.CompilerParams(
            dimension_semantics=("parallel",),
            vmem_limit_bytes=48 * 1024 * 1024),
    )(idx, x3, w3, table)

    # Dropout(p=0.1) in eval mode == identity.
    return out[:M, :D].reshape(B, L, D)


def _reference(x, x_mark, params):
    """Pure-JAX reference (same math, no Pallas) for a sanity check."""
    B, L, C = x.shape
    D = params["conv_w"].shape[0]
    xp = jnp.roll(x, 1, axis=1)
    xn = jnp.roll(x, -1, axis=1)
    conv = (jnp.einsum("blc,cd->bld", xp, params["conv_w"][:, :, 0].T)
            + jnp.einsum("blc,cd->bld", x, params["conv_w"][:, :, 1].T)
            + jnp.einsum("blc,cd->bld", xn, params["conv_w"][:, :, 2].T)
            + params["conv_b"][None, None, :])
    xm = x_mark.astype(jnp.int32)
    temporal = (jnp.take(params["hour"], xm[:, :, 3], axis=0)
                + jnp.take(params["weekday"], xm[:, :, 2], axis=0)
                + jnp.take(params["day"], xm[:, :, 1], axis=0)
                + jnp.take(params["month"], xm[:, :, 0], axis=0))
    pe = _sinusoid_table(L, D)
    return conv + temporal + pe[None, :, :]


if __name__ == "__main__":
    B, L, C_IN, D_MODEL = 2, 8, 4, 32

    key = jax.random.PRNGKey(0)
    k_params, k_x, k_mark = jax.random.split(key, 3)

    params = init_params(k_params, C_IN, D_MODEL)

    x = jax.random.normal(k_x, (B, L, C_IN), jnp.float32)
    # time marks: [month 0..12, day 0..31, weekday 0..6, hour 0..23, minute 0..3]
    highs = jnp.array([13, 32, 7, 24, 4], jnp.int32)
    x_mark = jax.random.randint(k_mark, (B, L, 5), 0, 1_000_000) % highs

    out = data_embedding_new(x, x_mark, params)
    jax.block_until_ready(out)
    assert out.shape == (B, L, D_MODEL), out.shape

    ref = _reference(x, x_mark, params)
    max_err = float(jnp.max(jnp.abs(out - ref)))
    assert max_err < 2e-3, f"max abs error {max_err}"

    print("KERNEL_OK")
</pallas_src>

<mosaic_0001>
module attributes {stable_mosaic.version = 11 : i64} {
  func.func @_embed_kernel(%arg0: i32, %arg1: memref<16x5xi32, #tpu.memory_space<vmem>>, %arg2: memref<16x12xf32, #tpu.memory_space<vmem>>, %arg3: memref<12x128xf32, #tpu.memory_space<vmem>>, %arg4: memref<88x128xf32, #tpu.memory_space<vmem>>, %arg5: memref<16x128xf32, #tpu.memory_space<vmem>>) attributes {dimension_semantics = [#tpu.dimension_semantics<parallel>], iteration_bounds = array<i64: 1>, scalar_prefetch = 0 : i64, scratch_operands = 0 : i64, tpu.core_type = #tpu.core_type<tc>, window_params = [{transform_indices = @transform_0, window_bounds = array<i64: 16, 5>}, {transform_indices = @transform_1, window_bounds = array<i64: 16, 12>}, {pipeline_mode = #tpu.pipeline_mode<synchronous>, transform_indices = @transform_2, window_bounds = array<i64: 12, 128>}, {pipeline_mode = #tpu.pipeline_mode<synchronous>, transform_indices = @transform_3, window_bounds = array<i64: 88, 128>}, {transform_indices = @transform_4, window_bounds = array<i64: 16, 128>}]} {
    %c0 = arith.constant 0 : index
    %c0_0 = arith.constant 0 : index
    %0 = vector.load %arg2[%c0, %c0_0] : memref<16x12xf32, #tpu.memory_space<vmem>>, vector<16x12xf32>
    %c0_1 = arith.constant 0 : index
    %c0_2 = arith.constant 0 : index
    %1 = vector.load %arg3[%c0_1, %c0_2] : memref<12x128xf32, #tpu.memory_space<vmem>>, vector<12x128xf32>
    %cst = arith.constant dense<0.000000e+00> : vector<16x128xf32>
    %2 = tpu.matmul %0, %1, %cst {dimension_numbers = #tpu.dot_dimension_numbers<[1], [0], [0], [1], [0, 0, 1, 1], [], []>} : vector<16x12xf32>, vector<12x128xf32>, vector<16x128xf32> -> vector<16x128xf32>
    %3 = tpu.iota {dimensions = array<i32: 1>} : vector<16x88xi32>
    %c0_3 = arith.constant 0 : index
    %c0_4 = arith.constant 0 : index
    %4 = vector.load %arg1[%c0_3, %c0_4] : memref<16x5xi32, #tpu.memory_space<vmem>>, vector<16x1xi32>
    %5 = vector.broadcast %4 : vector<16x1xi32> to vector<16x88xi32>
    %6 = arith.cmpi eq, %3, %5 : vector<16x88xi32>
    %c0_5 = arith.constant 0 : index
    %c1 = arith.constant 1 : index
    %7 = vector.load %arg1[%c0_5, %c1] : memref<16x5xi32, #tpu.memory_space<vmem>>, vector<16x1xi32>
    %8 = vector.broadcast %7 : vector<16x1xi32> to vector<16x88xi32>
    %9 = arith.cmpi eq, %3, %8 : vector<16x88xi32>
    %10 = arith.ori %6, %9 : vector<16x88xi1>
    %c0_6 = arith.constant 0 : index
    %c2 = arith.constant 2 : index
    %11 = vector.load %arg1[%c0_6, %c2] : memref<16x5xi32, #tpu.memory_space<vmem>>, vector<16x1xi32>
    %12 = vector.broadcast %11 : vector<16x1xi32> to vector<16x88xi32>
    %13 = arith.cmpi eq, %3, %12 : vector<16x88xi32>
    %14 = arith.ori %10, %13 : vector<16x88xi1>
    %c0_7 = arith.constant 0 : index
    %c3 = arith.constant 3 : index
    %15 = vector.load %arg1[%c0_7, %c3] : memref<16x5xi32, #tpu.memory_space<vmem>>, vector<16x1xi32>
    %16 = vector.broadcast %15 : vector<16x1xi32> to vector<16x88xi32>
    %17 = arith.cmpi eq, %3, %16 : vector<16x88xi32>
    %18 = arith.ori %14, %17 : vector<16x88xi1>
    %c0_8 = arith.constant 0 : index
    %c4 = arith.constant 4 : index
    %19 = vector.load %arg1[%c0_8, %c4] : memref<16x5xi32, #tpu.memory_space<vmem>>, vector<16x1xi32>
    %20 = vector.broadcast %19 : vector<16x1xi32> to vector<16x88xi32>
    %21 = arith.cmpi eq, %3, %20 : vector<16x88xi32>
    %22 = arith.ori %18, %21 : vector<16x88xi1>
    %23 = arith.extui %22 : vector<16x88xi1> to vector<16x88xi32>
    %24 = arith.sitofp %23 : vector<16x88xi32> to vector<16x88xf32>
    %c0_9 = arith.constant 0 : index
    %c0_10 = arith.constant 0 : index
    %25 = vector.load %arg4[%c0_9, %c0_10] : memref<88x128xf32, #tpu.memory_space<vmem>>, vector<88x128xf32>
    %cst_11 = arith.constant dense<0.000000e+00> : vector<16x128xf32>
    %26 = tpu.matmul %24, %25, %cst_11 {dimension_numbers = #tpu.dot_dimension_numbers<[1], [0], [0], [1], [0, 0, 1, 1], [], []>} : vector<16x88xf32>, vector<88x128xf32>, vector<16x128xf32> -> vector<16x128xf32>
    %27 = arith.addf %2, %26 : vector<16x128xf32>
    %c0_12 = arith.constant 0 : index
    %c0_13 = arith.constant 0 : index
    %28 = vector.load %arg5[%c0_12, %c0_13] : memref<16x128xf32, #tpu.memory_space<vmem>>, vector<16x128xf32>
    tpu.vector_store %arg5[%c0_12, %c0_13], %27 {strides = array<i32>} : memref<16x128xf32, #tpu.memory_space<vmem>>, vector<16x128xf32>,
    return
  }
  func.func @transform_0(%arg0: i32) -> (i32, i32) {
    %c0_i32 = arith.constant 0 : i32
    %c0_i32_0 = arith.constant 0 : i32
    return %arg0, %c0_i32 : i32, i32
  }
  func.func @transform_1(%arg0: i32) -> (i32, i32) {
    %c0_i32 = arith.constant 0 : i32
    %c0_i32_0 = arith.constant 0 : i32
    return %arg0, %c0_i32 : i32, i32
  }
  func.func @transform_2(%arg0: i32) -> (i32, i32) {
    %c0_i32 = arith.constant 0 : i32
    %c0_i32_0 = arith.constant 0 : i32
    %c0_i32_1 = arith.constant 0 : i32
    return %c0_i32, %c0_i32_0 : i32, i32
  }
  func.func @transform_3(%arg0: i32) -> (i32, i32) {
    %c0_i32 = arith.constant 0 : i32
    %c0_i32_0 = arith.constant 0 : i32
    %c0_i32_1 = arith.constant 0 : i32
    return %c0_i32, %c0_i32_0 : i32, i32
  }
  func.func @transform_4(%arg0: i32) -> (i32, i32) {
    %c0_i32 = arith.constant 0 : i32
    %c0_i32_0 = arith.constant 0 : i32
    return %arg0, %c0_i32 : i32, i32
  }
}

</mosaic_0001>

<bundles_post_ra>
// kernel: tpu_custom_call.1
= control target key start
LH: loop header
LB: loop body
LE: loop exit
PB: predicated region body
PF: predicated region fallthrough
CT: control target
= control target key end

     0   :  { %9 = vsyncpa [#allocation3], 0  ;;  %s393_s0 = inlined_call_operand.vmem [shape: s32[16,5], index: 0, kind: input, shape index: {}]   ;;  %s394_s1 = inlined_call_operand.vmem [shape: f32[16,12], index: 1, kind: input, shape index: {}]   ;;  %s395_s2 = inlined_call_operand.hbm [shape: f32[12,128], index: 2, kind: input, shape index: {}]   ;;  %s396_s3 = inlined_call_operand.hbm [shape: f32[88,128], index: 3, kind: input, shape index: {}]   ;;  %s397_s4 = inlined_call_operand.hbm [shape: f32[16,128], index: 4, kind: output, shape index: {}]  }
   0x1   :  { %10 = vsyncpa [#allocation6], 0 }
   0x2   :  { %11 = vsyncpa [#allocation4], 0  ;;  %s20_s17 = sshll.u32 %s395_s2, 4  ;;  %s325_s18 = smov [#allocation2]   ;;  %s21_s17 = int_to_ptr.hbm [resolvable:$true] %s20_s17 }
   0x3   :  { %s22_s19 = sshll.u32 %s325_s18, 4  ;;  %s33_s22 = sshll.u32 %s396_s3, 4  ;;  %s23_s19 = int_to_ptr.vmem [resolvable:$true] %s22_s19  ;;  %s34_s22 = int_to_ptr.hbm [resolvable:$true] %s33_s22 }
   0x4   :  { %s326_s23 = smov 128   ;;  %s327_s24 = smov 8  }
   0x5   :  { %28 = dma.hbm_to_vmem [thread:$0]  %s21_s17, 256, %s23_s19, [#allocation3], %s326_s23, %s326_s23, %s327_s24  }
   0x6   :  { %s328_s25 = smov [#allocation5]  }
   0x7   :  { %s35_s26 = sshll.u32 %s328_s25, 4  ;;  %s36_s26 = int_to_ptr.vmem [resolvable:$true] %s35_s26 }
   0x8   :  { %41 = dma.hbm_to_vmem [thread:$0]  %s34_s22, 1408, %s36_s26, [#allocation6], %s326_s23, %s326_s23, %s327_s24  }
   0x9   :  { %319 = dma.done.wait [#allocation3], 256  }
   0xa   :  { %320 = vsyncadd [#allocation3], 4294967040 }
   0xb   :  { %321 = dma.done.wait [#allocation6], 1408  }
   0xc   :  { %322 = vsyncadd [#allocation6], 4294965888  ;;  %v329_v0 = vmov 2   ;;  %v330_v1 = vmov 0   ;;  %v331_v2 = vmov 4   ;;  %v57_v3 = vld [vmem:[%s393_s0 + $0x8] sm:$0xff]  ;;  %v54_v25 = vlaneseq }
   0xd   :  { %238 = vset.pattern.permute.xlu1 %v329_v0  ;;  %236 = vset.pattern.permute.xlu0 %v330_v1  ;;  %v120_v4 = vld [vmem:[#allocation5 + $0x50] sm:$0xff]  ;;  %v119_v5 = vld [vmem:[#allocation5 + $0x48] sm:$0xff]  ;;  %v118_v6 = vld [vmem:[#allocation5 + $0x40] sm:$0xff]  ;;  %v332_v7 = vmov 3   ;;  %v333_v8 = vmov 1   ;;  %vm158_vm0 = vcmask 1043456  }
   0xe   :  { %240 = vset.pattern.permute.xlu2 %v331_v2  ;;  %80 = vperm.xlu1 %238, %v57_v3   ;;  %v56_v9 = vld [vmem:[%s393_s0] sm:$0xff]  ;;  %v117_v10 = vld [vmem:[#allocation5 + $0x38] sm:$0xff]  ;;  %v115_v12 = vld [vmem:[#allocation5 + $0x28] sm:$0xff]  ;;  %vm151_vm1 = vcmask 97280   ;;  %v55_v26 = vand.u32 127, %v54_v25  ;;  %vm121_vm10 = vcmask 719872  }
   0xf   :  { %62 = vperm.xlu0 %236, %v57_v3   ;;  %100 = vperm.xlu2 %240, %v57_v3   ;;  %v116_v11 = vld [vmem:[#allocation5 + $0x30] sm:$0xff]  ;;  %v114_v13 = vld [vmem:[#allocation5 + $0x20] sm:$0xff]  ;;  %v113_v14 = vld [vmem:[#allocation5 + $0x18] sm:$0xff]  ;;  %v334_v30 = vmov 0.0   ;;  %s193_s9 = sshll.u32 %s397_s4, 4  ;;  %s194_s9 = int_to_ptr.hbm [resolvable:$true] %s193_s9 }
  0x10   :  { %214 = vmatpush.msra.mxu2 %v120_v4  ;;  %133 = vmatpush.msra.mxu0 %v120_v4  ;;  %v112_v15 = vld [vmem:[#allocation5 + $0x10] sm:$0xff]  ;;  %v53_v16 = vld [vmem:[#allocation2 + $0x8] sm:$0xf]  ;;  %v111_v17 = vld [vmem:[#allocation5 + $0x8] sm:$0xff] }
  0x11   :  { %211 = vmatpush.msk.msra.mxu1 %vm158_vm0, %v53_v16  ;;  %v52_v18 = vld [vmem:[#allocation2] sm:$0xff]  ;;  %v110_v20 = vld [vmem:[#allocation5] sm:$0xff]  ;;  %v51_v21 = vld [vmem:[%s394_s1 + $0x8] sm:$0xff] }
  0x12   :  { %215 = vmatpush.msra.mxu2 %v119_v5  ;;  %134 = vmatpush.msra.mxu0 %v119_v5  ;;  %v50_v19 = vld [vmem:[%s394_s1] sm:$0xff]  ;;  %s335_s1 = smov [#allocation7]  }
  0x13   :  { %177 = vmatpush.msra.mxu1 %v52_v18  ;;  %s191_s6 = sshll.u32 %s335_s1, 4  ;;  %s192_s6 = int_to_ptr.vmem [resolvable:$true] %s191_s6 }
  0x14   :  { %216 = vmatpush.msra.mxu2 %v118_v6  ;;  %135 = vmatpush.msra.mxu0 %v118_v6 }
  0x15   :  { %212 = vmatmul.msk.f32.vlgmr.msra.gmra.mxu1 %vm151_vm1, %v50_v19 }
  0x16   :  { %239 = vset.pattern.permute.xlu1 %v332_v7  ;;  %217 = vmatpush.msra.mxu2 %v117_v10 }
  0x17   :  { %237 = vset.pattern.permute.xlu0 %v333_v8  ;;  %90 = vperm.xlu1 %239, %v57_v3  }
  0x18   :  { %70 = vperm.xlu0 %237, %v57_v3   ;;  %241 = vset.pattern.permute.xlu2 %v330_v1 }
  0x19   :  { %59 = vperm.xlu2 %241, %v56_v9   ;;  %136 = vmatpush.msra.mxu0 %v117_v10 }
  0x1a   :  { %218 = vmatpush.msra.mxu2 %v116_v11 }
  0x1b   :  { %137 = vmatpush.msra.mxu0 %v116_v11 }
  0x1c   :  { %219 = vmatpush.msra.mxu2 %v115_v12 }
  0x1d   :  { %138 = vmatpush.msra.mxu0 %v115_v12  ;;  %213 = vmatmul.msk.f32.gmra.mxu1 %vm151_vm1, %v51_v21 }
  0x1e   :  { %220 = vmatpush.msra.mxu2 %v114_v13 }
  0x1f   :  { %242 = vset.pattern.permute.xlu1 %v333_v8  ;;  %139 = vmatpush.msra.mxu0 %v114_v13 }
  0x20   :  { %244 = vset.pattern.permute.xlu0 %v332_v7  ;;  %67 = vperm.xlu1 %242, %v56_v9  }
  0x21   :  { %87 = vperm.xlu0 %244, %v56_v9   ;;  %243 = vset.pattern.permute.xlu2 %v329_v0 }
  0x22   :  { %77 = vperm.xlu2 %243, %v56_v9   ;;  %221 = vmatpush.msra.mxu2 %v113_v14 }
  0x23   :  { %140 = vmatpush.msra.mxu0 %v113_v14 }
  0x24   :  { %222 = vmatpush.msra.mxu2 %v112_v15 }
  0x25   :  { %141 = vmatpush.msra.mxu0 %v112_v15 }
  0x26   :  { %223 = vmatpush.msra.mxu2 %v111_v17 }
  0x27   :  { %142 = vmatpush.msra.mxu0 %v111_v17 }
  0x28   :  { %245 = vset.pattern.permute.xlu1 %v331_v2  ;;  %224 = vmatpush.msra.mxu2 %v110_v20 }
  0x29   :  { %246 = vset.pattern.permute.xlu0 %v331_v2  ;;  %97 = vperm.xlu1 %245, %v56_v9  }
  0x2a   :  { %143 = vmatpush.msra.mxu0 %v110_v20 }
  0x69   :  { %v101_v22 = vpop.permute.xlu2 %100 }
  0x6a   :  { %vm103_vm8 = vcmp.eq.s32.totalorder %v55_v26, %v101_v22 }
  0x73   :  { %v60_v27 = vpop.permute.xlu2 %59 }
  0x74   :  { %vm64_vm13 = vcmp.eq.s32.totalorder %v55_v26, %v60_v27 }
  0x7c   :  { %v78_v33 = vpop.permute.xlu2 %77 }
  0x7d   :  { %vm82_vm15 = vcmp.eq.s32.totalorder %v55_v26, %v78_v33 }
  0x80   :  { %v81_v23 = vpop.permute.xlu1 %80 }
  0x81   :  { %v63_v24 = vpop.permute.xlu0 %62  ;;  %vm83_vm4 = vcmp.eq.s32.totalorder %v55_v26, %v81_v23 }
  0x82   :  { %vm65_vm2 = vcmp.eq.s32.totalorder %v55_v26, %v63_v24 }
  0x89   :  { %v91_v28 = vpop.permute.xlu1 %90 }
  0x8a   :  { %v71_v29 = vpop.permute.xlu0 %70  ;;  %vm93_vm6 = vcmp.eq.s32.totalorder %v55_v26, %v91_v28 }
  0x8b   :  { %vm73_vm3 = vcmp.eq.s32.totalorder %v55_v26, %v71_v29 }
  0x8c   :  { %vm75_vm5 = vmor %vm65_vm2, %vm73_vm3 }
  0x8d   :  { %vm85_vm7 = vmor %vm75_vm5, %vm83_vm4 }
  0x8e   :  { %vm95_vm9 = vmor %vm85_vm7, %vm93_vm6 }
  0x8f   :  { %vm105_vm11 = vmor %vm95_vm9, %vm103_vm8 }
  0x90   :  { %v208_v31 = vsel %vm105_vm11, 1.0, %v334_v30 }
  0x91   :  { %210 = vmatmul.msk.f32.vlgmr.msra.gmra.mxu2 %vm121_vm10, %v208_v31 }
  0x92   :  { %v68_v32 = vpop.permute.xlu1 %67  ;;  %v179_v37 = vpop.f32.mrf.mxu1 }
  0x93   :  { %vm72_vm12 = vcmp.eq.s32.totalorder %v55_v26, %v68_v32  ;;  %v88_v34 = vpop.permute.xlu0 %87 }
  0x94   :  { %vm74_vm14 = vmor %vm64_vm13, %vm72_vm12  ;;  %vm92_vm1 = vcmp.eq.s32.totalorder %v55_v26, %v88_v34 }
  0x95   :  { %vm84_vm0 = vmor %vm74_vm14, %vm82_vm15 }
  0x96   :  { %vm94_vm2 = vmor %vm84_vm0, %vm92_vm1 }
  0x9a   :  { %v182_v38 = vpop.f32.mrf.mxu1 }
  0x9b   :  { %v98_v35 = vpop.permute.xlu1 %97 }
  0x9c   :  { %vm102_vm3 = vcmp.eq.s32.totalorder %v55_v26, %v98_v35 }
  0x9d   :  { %vm104_vm4 = vmor %vm94_vm2, %vm102_vm3 }
  0x9e   :  { %v207_v36 = vsel %vm104_vm4, 1.0, %v334_v30 }
  0x9f   :  { %209 = vmatmul.msk.f32.vlgmr.msra.gmra.mxu0 %vm121_vm10, %v207_v36 }
 0x114   :  { %v148_v39 = vpop.f32.mrf.mxu2 }
 0x115   :  { %v183_v40 = vadd.f32 %v182_v38, %v148_v39 }
 0x117   :  { %186 = vst [vmem:[#allocation7 + $0x8] sm:$0xff] %v183_v40 }
 0x11c   :  { %v145_v41 = vpop.f32.mrf.mxu0 }
 0x11d   :  { %v180_v42 = vadd.f32 %v179_v37, %v145_v41 }
 0x11f   :  { %185 = vst [vmem:[#allocation7] sm:$0xff] %v180_v42 }
 0x120   :  { %199 = dma.vmem_to_hbm [thread:$0]  %s192_s6, 256, %s194_s9, [#allocation4], %s326_s23, %s326_s23, %s327_s24  }
 0x121   :  { %323 = dma.done.wait [#allocation4], 256  }
 0x122   :  { %324 = vsyncadd [#allocation4], 4294967040 }
 0x123   :  { %204 = vsyncpa [#allocation3], 1 }
 0x124   :  { %205 = vsyncpa [#allocation6], 1 }
 0x125   :  { %206 = vsyncpa [#allocation4], 1 }

</bundles_post_ra>
